<compile_context>
chip_gen: v7x
topology: tpu7x:2x2x1
jax: 0.10.0
libtpu: 0.0.40
codegen_flags: <defaults>
</compile_context>

<pallas_src>
import functools
from math import sqrt

import jax
import jax.numpy as jnp
from jax.experimental import pallas as pl
from jax.experimental.pallas import tpu as pltpu

_LANE = 128
_BN_EPS = 1e-5        # nn.BatchNorm1d default
_LEAKY_SLOPE = 0.01   # F.leaky_relu default


def _round_up(n, m=_LANE):
    return ((n + m - 1) // m) * m


def _apply_activation(y, activation):
    if activation == "leaky":
        return jnp.where(y >= 0, y, _LEAKY_SLOPE * y)
    if activation == "tanh":
        return jnp.tanh(y)
    if activation == "relu":
        return jnp.maximum(y, 0.0)
    if activation == "elu":
        return jnp.where(y > 0, y, jnp.exp(y) - 1.0)
    if activation == "gelu":
        # TODO(synk): PyTorch F.gelu defaults to the exact erf form; tanh approx used here.
        return jax.nn.gelu(y, approximate=True)
    if activation == "linear":
        return y
    raise ValueError("Unsupported activation: %s" % activation)


def _fused_generator_block_kernel(*refs, layers, use_bf16_matmul):
    """Entire GeneratorBlock in one kernel; activations never touch HBM.

    refs = (x_ref, <per-layer param refs...>, out_ref)
      BN layer passes:   w, gamma_beta(2, Dpad)   (bias dropped: BN mean-sub cancels it)
      final layer passes: w, b(1, Dpad)
    """
    x_ref = refs[0]
    o_ref = refs[-1]
    params = refs[1:-1]

    h = x_ref[...].astype(jnp.float32)                 # (B, Dpad_in)
    inv_b = jnp.float32(1.0 / h.shape[0])

    idx = 0
    for layer in layers:
        w = params[idx][...]
        idx += 1
        if use_bf16_matmul:
            y = jnp.dot(h.astype(jnp.bfloat16), w.astype(jnp.bfloat16),
                        preferred_element_type=jnp.float32)
        else:
            y = jnp.dot(h, w.astype(jnp.float32),
                        preferred_element_type=jnp.float32)

        if layer["use_bn"]:
            gb = params[idx][...].astype(jnp.float32)   # (2, Dout_pad)
            idx += 1
            gamma = gb[0:1, :]
            beta = gb[1:2, :]
            # One-pass batch statistics (training-mode BN, biased variance),
            # folded with the affine transform into one scale/shift FMA.
            s = jnp.sum(y, axis=0, keepdims=True)
            s2 = jnp.sum(y * y, axis=0, keepdims=True)
            mean = s * inv_b
            var = jnp.maximum(s2 * inv_b - mean * mean, 0.0)
            scale = gamma * jax.lax.rsqrt(var + _BN_EPS)    # EUP rsqrt (free slot)
            shift = beta - mean * scale
            y = y * scale + shift
        else:
            b = params[idx][...].astype(jnp.float32)    # (1, Dout_pad)
            idx += 1
            y = y + b

        h = _apply_activation(y, layer["activation"])

    o_ref[...] = h.astype(o_ref.dtype)


def init_generator_block_params(key, layer_dims, output_dim,
                                hidden_act="leaky", output_act="tanh"):
    """Parameters mirroring GeneratorBlock.__init__, zero-padded to 128-lane multiples."""
    dims = list(layer_dims) + [output_dim]
    n_layers = len(dims) - 1
    layers = []
    for i in range(n_layers):
        din, dout = dims[i], dims[i + 1]
        din_p, dout_p = _round_up(din), _round_up(dout)
        key, kw, kb = jax.random.split(key, 3)
        # xavier_uniform (GeneratorLayer.reset_parameters)
        w_bound = sqrt(6.0 / (din + dout))
        w = jax.random.uniform(kw, (din, dout), jnp.float32, -w_bound, w_bound)
        # nn.Linear default bias init
        b_bound = 1.0 / sqrt(din)
        b = jax.random.uniform(kb, (1, dout), jnp.float32, -b_bound, b_bound)
        is_last = (i == n_layers - 1)
        # Zero padding keeps padded activation columns identically zero through
        # every layer (zero weight rows/cols; gamma=0, beta=0 in the padding).
        w_p = jnp.zeros((din_p, dout_p), jnp.float32).at[:din, :dout].set(w)
        b_p = jnp.zeros((1, dout_p), jnp.float32).at[:, :dout].set(b)
        gamma_beta_p = jnp.zeros((2, dout_p), jnp.float32).at[0, :dout].set(1.0)
        layers.append({
            "w": w_p, "b": b_p, "gamma_beta": gamma_beta_p,
            "use_bn": not is_last,
            "activation": output_act if is_last else hidden_act,
            "in_features": din, "out_features": dout,
        })
    return {"layers": layers, "input_dim": dims[0], "output_dim": output_dim}


def generator_block_forward(x, block, *, use_bf16_matmul=False):
    """Run the whole GeneratorBlock as a single fused Pallas kernel."""
    layers = block["layers"]
    batch, din = x.shape
    assert din == block["input_dim"]

    din_p = layers[0]["w"].shape[0]
    if din_p != din:
        x = jnp.pad(x, ((0, 0), (0, din_p - din)))

    inputs = [x]
    meta = []
    for lp in layers:
        inputs.append(lp["w"])
        if lp["use_bn"]:
            inputs.append(lp["gamma_beta"])   # bias not passed: BN cancels it
        else:
            inputs.append(lp["b"])
        meta.append({"use_bn": lp["use_bn"], "activation": lp["activation"]})

    dout_p = layers[-1]["w"].shape[1]
    kernel = functools.partial(_fused_generator_block_kernel,
                               layers=meta, use_bf16_matmul=use_bf16_matmul)
    vmem = pl.BlockSpec(memory_space=pltpu.MemorySpace.VMEM)
    # No grid: the whole (tiny) problem fits VMEM in one shot; a grid would only
    # add per-step overhead (~0.35 us/step).  At large B / hidden dims you would
    # tile B ("parallel") and K ("arbitrary") with cross-tile-correct BN stats.
    out = pl.pallas_call(
        kernel,
        out_shape=jax.ShapeDtypeStruct((batch, dout_p), jnp.float32),
        in_specs=[vmem] * len(inputs),
        out_specs=vmem,
    )(*inputs)
    return out[:, : block["output_dim"]]


if __name__ == "__main__":
    key = jax.random.PRNGKey(0)
    k_in, k_params = jax.random.split(key)

    # Small shapes consistent with the module: x is (batch, layer_dims[0]).
    batch = 8
    layer_dims = [32, 64, 48]
    output_dim = 16

    x = jax.random.normal(k_in, (batch, layer_dims[0]), dtype=jnp.float32)
    block = init_generator_block_params(k_params, layer_dims, output_dim)

    out = generator_block_forward(x, block)
    out = jax.block_until_ready(out)

    assert out.shape == (batch, output_dim)
    assert bool(jnp.all(jnp.isfinite(out)))
    # output activation is tanh -> values in [-1, 1]
    assert bool(jnp.all(jnp.abs(out) <= 1.0 + 1e-6))

    print("KERNEL_OK")
</pallas_src>

<mosaic_0001>
module attributes {stable_mosaic.version = 11 : i64} {
  func.func @_fused_generator_block_kernel(%arg0: memref<8x128xf32, #tpu.memory_space<vmem>>, %arg1: memref<128x128xf32, #tpu.memory_space<vmem>>, %arg2: memref<2x128xf32, #tpu.memory_space<vmem>>, %arg3: memref<128x128xf32, #tpu.memory_space<vmem>>, %arg4: memref<2x128xf32, #tpu.memory_space<vmem>>, %arg5: memref<128x128xf32, #tpu.memory_space<vmem>>, %arg6: memref<1x128xf32, #tpu.memory_space<vmem>>, %arg7: memref<8x128xf32, #tpu.memory_space<vmem>>) attributes {dimension_semantics = [], scalar_prefetch = 0 : i64, scratch_operands = 0 : i64, tpu.core_type = #tpu.core_type<tc>} {
    %c0 = arith.constant 0 : index
    %c0_0 = arith.constant 0 : index
    %0 = vector.load %arg0[%c0, %c0_0] : memref<8x128xf32, #tpu.memory_space<vmem>>, vector<8x128xf32>
    %c0_1 = arith.constant 0 : index
    %c0_2 = arith.constant 0 : index
    %1 = vector.load %arg1[%c0_1, %c0_2] : memref<128x128xf32, #tpu.memory_space<vmem>>, vector<128x128xf32>
    %cst = arith.constant dense<0.000000e+00> : vector<8x128xf32>
    %2 = tpu.matmul %0, %1, %cst {dimension_numbers = #tpu.dot_dimension_numbers<[1], [0], [0], [1], [0, 0, 1, 1], [], []>} : vector<8x128xf32>, vector<128x128xf32>, vector<8x128xf32> -> vector<8x128xf32>
    %c0_3 = arith.constant 0 : index
    %c0_4 = arith.constant 0 : index
    %3 = vector.load %arg2[%c0_3, %c0_4] : memref<2x128xf32, #tpu.memory_space<vmem>>, vector<2x128xf32>
    %4 = vector.extract_strided_slice %3 {offsets = [0, 0], sizes = [1, 128], strides = [1, 1]} : vector<2x128xf32> to vector<1x128xf32>
    %5 = vector.extract_strided_slice %3 {offsets = [1, 0], sizes = [1, 128], strides = [1, 1]} : vector<2x128xf32> to vector<1x128xf32>
    %cst_5 = arith.constant dense<0.000000e+00> : vector<128xf32>
    %6 = vector.multi_reduction <add>, %2, %cst_5 [0] : vector<8x128xf32> to vector<128xf32>
    %7 = vector.shape_cast %6 : vector<128xf32> to vector<1x128xf32>
    %8 = arith.mulf %2, %2 : vector<8x128xf32>
    %cst_6 = arith.constant dense<0.000000e+00> : vector<128xf32>
    %9 = vector.multi_reduction <add>, %8, %cst_6 [0] : vector<8x128xf32> to vector<128xf32>
    %10 = vector.shape_cast %9 : vector<128xf32> to vector<1x128xf32>
    %cst_7 = arith.constant 1.250000e-01 : f32
    %11 = vector.broadcast %cst_7 : f32 to vector<1x128xf32>
    %12 = arith.mulf %7, %11 : vector<1x128xf32>
    %cst_8 = arith.constant 1.250000e-01 : f32
    %13 = vector.broadcast %cst_8 : f32 to vector<1x128xf32>
    %14 = arith.mulf %10, %13 : vector<1x128xf32>
    %15 = arith.mulf %12, %12 : vector<1x128xf32>
    %16 = arith.subf %14, %15 : vector<1x128xf32>
    %cst_9 = arith.constant 0.000000e+00 : f32
    %17 = vector.broadcast %cst_9 : f32 to vector<1x128xf32>
    %18 = arith.maximumf %16, %17 : vector<1x128xf32>
    %cst_10 = arith.constant 9.99999974E-6 : f32
    %19 = vector.broadcast %cst_10 : f32 to vector<1x128xf32>
    %20 = arith.addf %18, %19 : vector<1x128xf32>
    %21 = math.rsqrt %20 : vector<1x128xf32>
    %22 = arith.mulf %4, %21 : vector<1x128xf32>
    %23 = arith.mulf %12, %22 : vector<1x128xf32>
    %24 = arith.subf %5, %23 : vector<1x128xf32>
    %25 = vector.broadcast %22 : vector<1x128xf32> to vector<8x128xf32>
    %26 = arith.mulf %2, %25 : vector<8x128xf32>
    %27 = vector.broadcast %24 : vector<1x128xf32> to vector<8x128xf32>
    %28 = arith.addf %26, %27 : vector<8x128xf32>
    %cst_11 = arith.constant 0.000000e+00 : f32
    %29 = vector.broadcast %cst_11 : f32 to vector<8x128xf32>
    %30 = arith.cmpf oge, %28, %29 : vector<8x128xf32>
    %cst_12 = arith.constant 0.00999999977 : f32
    %31 = vector.broadcast %cst_12 : f32 to vector<8x128xf32>
    %32 = arith.mulf %31, %28 : vector<8x128xf32>
    %33 = arith.select %30, %28, %32 : vector<8x128xi1>, vector<8x128xf32>
    %c0_13 = arith.constant 0 : index
    %c0_14 = arith.constant 0 : index
    %34 = vector.load %arg3[%c0_13, %c0_14] : memref<128x128xf32, #tpu.memory_space<vmem>>, vector<128x128xf32>
    %cst_15 = arith.constant dense<0.000000e+00> : vector<8x128xf32>
    %35 = tpu.matmul %33, %34, %cst_15 {dimension_numbers = #tpu.dot_dimension_numbers<[1], [0], [0], [1], [0, 0, 1, 1], [], []>} : vector<8x128xf32>, vector<128x128xf32>, vector<8x128xf32> -> vector<8x128xf32>
    %c0_16 = arith.constant 0 : index
    %c0_17 = arith.constant 0 : index
    %36 = vector.load %arg4[%c0_16, %c0_17] : memref<2x128xf32, #tpu.memory_space<vmem>>, vector<2x128xf32>
    %37 = vector.extract_strided_slice %36 {offsets = [0, 0], sizes = [1, 128], strides = [1, 1]} : vector<2x128xf32> to vector<1x128xf32>
    %38 = vector.extract_strided_slice %36 {offsets = [1, 0], sizes = [1, 128], strides = [1, 1]} : vector<2x128xf32> to vector<1x128xf32>
    %cst_18 = arith.constant dense<0.000000e+00> : vector<128xf32>
    %39 = vector.multi_reduction <add>, %35, %cst_18 [0] : vector<8x128xf32> to vector<128xf32>
    %40 = vector.shape_cast %39 : vector<128xf32> to vector<1x128xf32>
    %41 = arith.mulf %35, %35 : vector<8x128xf32>
    %cst_19 = arith.constant dense<0.000000e+00> : vector<128xf32>
    %42 = vector.multi_reduction <add>, %41, %cst_19 [0] : vector<8x128xf32> to vector<128xf32>
    %43 = vector.shape_cast %42 : vector<128xf32> to vector<1x128xf32>
    %cst_20 = arith.constant 1.250000e-01 : f32
    %44 = vector.broadcast %cst_20 : f32 to vector<1x128xf32>
    %45 = arith.mulf %40, %44 : vector<1x128xf32>
    %cst_21 = arith.constant 1.250000e-01 : f32
    %46 = vector.broadcast %cst_21 : f32 to vector<1x128xf32>
    %47 = arith.mulf %43, %46 : vector<1x128xf32>
    %48 = arith.mulf %45, %45 : vector<1x128xf32>
    %49 = arith.subf %47, %48 : vector<1x128xf32>
    %cst_22 = arith.constant 0.000000e+00 : f32
    %50 = vector.broadcast %cst_22 : f32 to vector<1x128xf32>
    %51 = arith.maximumf %49, %50 : vector<1x128xf32>
    %cst_23 = arith.constant 9.99999974E-6 : f32
    %52 = vector.broadcast %cst_23 : f32 to vector<1x128xf32>
    %53 = arith.addf %51, %52 : vector<1x128xf32>
    %54 = math.rsqrt %53 : vector<1x128xf32>
    %55 = arith.mulf %37, %54 : vector<1x128xf32>
    %56 = arith.mulf %45, %55 : vector<1x128xf32>
    %57 = arith.subf %38, %56 : vector<1x128xf32>
    %58 = vector.broadcast %55 : vector<1x128xf32> to vector<8x128xf32>
    %59 = arith.mulf %35, %58 : vector<8x128xf32>
    %60 = vector.broadcast %57 : vector<1x128xf32> to vector<8x128xf32>
    %61 = arith.addf %59, %60 : vector<8x128xf32>
    %cst_24 = arith.constant 0.000000e+00 : f32
    %62 = vector.broadcast %cst_24 : f32 to vector<8x128xf32>
    %63 = arith.cmpf oge, %61, %62 : vector<8x128xf32>
    %cst_25 = arith.constant 0.00999999977 : f32
    %64 = vector.broadcast %cst_25 : f32 to vector<8x128xf32>
    %65 = arith.mulf %64, %61 : vector<8x128xf32>
    %66 = arith.select %63, %61, %65 : vector<8x128xi1>, vector<8x128xf32>
    %c0_26 = arith.constant 0 : index
    %c0_27 = arith.constant 0 : index
    %67 = vector.load %arg5[%c0_26, %c0_27] : memref<128x128xf32, #tpu.memory_space<vmem>>, vector<128x128xf32>
    %cst_28 = arith.constant dense<0.000000e+00> : vector<8x128xf32>
    %68 = tpu.matmul %66, %67, %cst_28 {dimension_numbers = #tpu.dot_dimension_numbers<[1], [0], [0], [1], [0, 0, 1, 1], [], []>} : vector<8x128xf32>, vector<128x128xf32>, vector<8x128xf32> -> vector<8x128xf32>
    %c0_29 = arith.constant 0 : index
    %c0_30 = arith.constant 0 : index
    %69 = vector.load %arg6[%c0_29, %c0_30] : memref<1x128xf32, #tpu.memory_space<vmem>>, vector<1x128xf32>
    %70 = vector.broadcast %69 : vector<1x128xf32> to vector<8x128xf32>
    %71 = arith.addf %68, %70 : vector<8x128xf32>
    %72 = math.tanh %71 : vector<8x128xf32>
    %c0_31 = arith.constant 0 : index
    %c0_32 = arith.constant 0 : index
    %73 = vector.load %arg7[%c0_31, %c0_32] : memref<8x128xf32, #tpu.memory_space<vmem>>, vector<8x128xf32>
    tpu.vector_store %arg7[%c0_31, %c0_32], %72 {strides = array<i32>} : memref<8x128xf32, #tpu.memory_space<vmem>>, vector<8x128xf32>,
    return
  }
}

</mosaic_0001>

<bundles_post_ra>
// kernel: tpu_custom_call.1
= control target key start
LH: loop header
LB: loop body
LE: loop exit
PB: predicated region body
PF: predicated region fallthrough
CT: control target
= control target key end

     0   :  { %12 = vsyncpa [#allocation3], 0  ;;  %s975_s0 = inlined_call_operand.hbm [shape: f32[8,128], index: 0, kind: input, shape index: {}]   ;;  %s976_s1 = inlined_call_operand.hbm [shape: f32[128,128], index: 1, kind: input, shape index: {}]   ;;  %s977_s2 = inlined_call_operand.vmem [shape: f32[2,128], index: 2, kind: input, shape index: {}]   ;;  %s978_s3 = inlined_call_operand.hbm [shape: f32[128,128], index: 3, kind: input, shape index: {}]   ;;  %s979_s4 = inlined_call_operand.vmem [shape: f32[2,128], index: 4, kind: input, shape index: {}]   ;;  %s980_s5 = inlined_call_operand.hbm [shape: f32[128,128], index: 5, kind: input, shape index: {}]   ;;  %s981_s6 = inlined_call_operand.vmem [shape: f32[1,128], index: 6, kind: input, shape index: {}]   ;;  %s982_s7 = inlined_call_operand.hbm [shape: f32[8,128], index: 7, kind: output, shape index: {}]  }
   0x1   :  { %13 = vsyncpa [#allocation6], 0 }
   0x2   :  { %14 = vsyncpa [#allocation9], 0 }
   0x3   :  { %15 = vsyncpa [#allocation4], 0  ;;  %s808_s24 = smov [#allocation5]   ;;  %s690_s28 = scalar_lea.hbm %s976_s1, 2048 }
   0x4   :  { %s31_s25 = sshll.u32 %s808_s24, 4  ;;  %p691_p0 = scmp.ne.s32.totalorder %s976_s1, %s690_s28  ;;  %s32_s25 = int_to_ptr.vmem [resolvable:$true] %s31_s25 }
   0x5   :  { %p694_p1 = scmp.lt.u32.totalorder %s690_s28, %s976_s1 }
   0x7   :  { %p696_p2 = pnand %p694_p1, %p691_p0 }
   0x9   :  { %699 = shalt.err (!%p696_p2)
}
   0xa   :  { %s700_s10 = scalar_lea.vmem %s32_s25, 2048  ;;  %p705_p4 = scmp.lt.s32.totalorder %s32_s25, %s32_s25 }
   0xb   :  { %p701_p3 = scmp.ne.s32.totalorder %s32_s25, %s700_s10  ;;  %p706_p5 = scmp.lt.s32.totalorder %s700_s10, %s700_s10 }
   0xd   :  { %p707_p6 = por %p706_p5, %p705_p4 }
   0xf   :  { %p708_p7 = pnand %p707_p6, %p701_p3 }
  0x11   :  { %711 = shalt.err (!%p708_p7)
}
  0x12   :  { %s809_s11 = smov 128   ;;  %s810_s12 = smov 8  }
  0x13   :  { %37 = dma.hbm_to_vmem [thread:$0]  %s976_s1, 2048, %s32_s25, [#allocation6], %s809_s11, %s809_s11, %s810_s12  }
  0x14   :  { %s811_s15 = smov [#allocation2]   ;;  %s812_s17 = smov [#allocation7]  }
  0x15   :  { %s22_s16 = sshll.u32 %s811_s15, 4  ;;  %s45_s18 = sshll.u32 %s812_s17, 4  ;;  %s23_s16 = int_to_ptr.vmem [resolvable:$true] %s22_s16  ;;  %s46_s18 = int_to_ptr.vmem [resolvable:$true] %s45_s18 }
  0x16   :  { %s712_s21 = scalar_lea.hbm %s975_s0, 128 }
  0x17   :  { %p713_p8 = scmp.ne.s32.totalorder %s975_s0, %s712_s21  ;;  %p716_p9 = scmp.lt.u32.totalorder %s712_s21, %s975_s0 }
  0x19   :  { %p718_p10 = pnand %p716_p9, %p713_p8 }
  0x1b   :  { %721 = shalt.err (!%p718_p10)
}
  0x1c   :  { %s722_s1 = scalar_lea.vmem %s23_s16, 128  ;;  %p727_p12 = scmp.lt.s32.totalorder %s23_s16, %s23_s16 }
  0x1d   :  { %p723_p11 = scmp.ne.s32.totalorder %s23_s16, %s722_s1  ;;  %p728_p13 = scmp.lt.s32.totalorder %s722_s1, %s722_s1 }
  0x1f   :  { %p729_p0 = por %p728_p13, %p727_p12 }
  0x21   :  { %p730_p1 = pnand %p729_p0, %p723_p11 }
  0x23   :  { %733 = shalt.err (!%p730_p1)
}
  0x24   :  { %25 = dma.hbm_to_vmem [thread:$0]  %s975_s0, 128, %s23_s16, [#allocation3]  }
  0x25   :  { %s734_s30 = scalar_lea.hbm %s978_s3, 2048 }
  0x26   :  { %p735_p2 = scmp.ne.s32.totalorder %s978_s3, %s734_s30  ;;  %p738_p3 = scmp.lt.u32.totalorder %s734_s30, %s978_s3 }
  0x28   :  { %p740_p4 = pnand %p738_p3, %p735_p2 }
  0x2a   :  { %743 = shalt.err (!%p740_p4)
}
  0x2b   :  { %s744_s14 = scalar_lea.vmem %s46_s18, 2048  ;;  %p749_p6 = scmp.lt.s32.totalorder %s46_s18, %s46_s18 }
  0x2c   :  { %p745_p5 = scmp.ne.s32.totalorder %s46_s18, %s744_s14  ;;  %p750_p7 = scmp.lt.s32.totalorder %s744_s14, %s744_s14 }
  0x2e   :  { %p751_p8 = por %p750_p7, %p749_p6 }
  0x30   :  { %p752_p9 = pnand %p751_p8, %p745_p5 }
  0x32   :  { %755 = shalt.err (!%p752_p9)
}
  0x33   :  { %51 = dma.hbm_to_vmem [thread:$0]  %s978_s3, 2048, %s46_s18, [#allocation6], %s809_s11, %s809_s11, %s810_s12  }
  0x34   :  { %s813_s16 = smov [#allocation8]   ;;  %s756_s21 = scalar_lea.hbm %s980_s5, 2048 }
  0x35   :  { %s59_s17 = sshll.u32 %s813_s16, 4  ;;  %p757_p10 = scmp.ne.s32.totalorder %s980_s5, %s756_s21  ;;  %s60_s17 = int_to_ptr.vmem [resolvable:$true] %s59_s17 }
  0x36   :  { %p760_p11 = scmp.lt.u32.totalorder %s756_s21, %s980_s5 }
  0x38   :  { %p762_p12 = pnand %p760_p11, %p757_p10 }
  0x3a   :  { %765 = shalt.err (!%p762_p12)
}
  0x3b   :  { %s766_s1 = scalar_lea.vmem %s60_s17, 2048  ;;  %p771_p0 = scmp.lt.s32.totalorder %s60_s17, %s60_s17 }
  0x3c   :  { %p767_p13 = scmp.ne.s32.totalorder %s60_s17, %s766_s1  ;;  %p772_p1 = scmp.lt.s32.totalorder %s766_s1, %s766_s1 }
  0x3e   :  { %p773_p2 = por %p772_p1, %p771_p0 }
  0x40   :  { %p774_p3 = pnand %p773_p2, %p767_p13 }
  0x42   :  { %777 = shalt.err (!%p774_p3)
}
  0x43   :  { %65 = dma.hbm_to_vmem [thread:$0]  %s980_s5, 2048, %s60_s17, [#allocation9], %s809_s11, %s809_s11, %s810_s12  }
  0x44   :  { %800 = dma.done.wait [#allocation3], 128  }
  0x45   :  { %801 = vsyncadd [#allocation3], 4294967168 }
  0x46   :  { %802 = dma.done.wait [#allocation6], 4096  }
  0x47   :  { %803 = vsyncadd [#allocation6], 4294963200 }
  0x48   :  { %804 = dma.done.wait [#allocation9], 2048  }
  0x49   :  { %805 = vsyncadd [#allocation9], 4294965248  ;;  %v814_v0 = vmov 0.0|0.0   ;;  %vm815_vm0 = vmmov 0   ;;  %v816_v1 = vmov 0.0   ;;  %v81_v2 = vld [vmem:[#allocation5] sm:$0xff] }
  0x4a   :  { %602 = vmatprep.subr.bf16.mxu0 %v814_v0  ;;  %529 = vmatprep.mubr.msk.f32.mxu0 %vm815_vm0, %v816_v1  ;;  %v82_v3 = vld [vmem:[#allocation5 + $0x8] sm:$0xff]  ;;  %v83_v4 = vld [vmem:[#allocation5 + $0x10] sm:$0xff]  ;;  %v84_v6 = vld [vmem:[#allocation5 + $0x18] sm:$0xff] }
  0x4b   :  { %626 = vmatprep.subr.bf16.mxu1 %v814_v0  ;;  %564 = vmatprep.mubr.msk.f32.mxu1 %vm815_vm0, %v816_v1  ;;  %v603_v5 = vpack.c.bf16 %v82_v3, %v81_v2  ;;  %v606_v7 = vpack.c.bf16 %v84_v6, %v83_v4  ;;  %v85_v8 = vld [vmem:[#allocation5 + $0x20] sm:$0xff]  ;;  %v86_v9 = vld [vmem:[#allocation5 + $0x28] sm:$0xff]  ;;  %v87_v11 = vld [vmem:[#allocation5 + $0x30] sm:$0xff] }
  0x4c   :  { %v609_v10 = vpack.c.bf16 %v86_v9, %v85_v8  ;;  %v88_v12 = vld [vmem:[#allocation5 + $0x38] sm:$0xff]  ;;  %v89_v14 = vld [vmem:[#allocation5 + $0x40] sm:$0xff]  ;;  %v90_v15 = vld [vmem:[#allocation5 + $0x48] sm:$0xff]  ;;  %v194_v9 = vlaneseq }
  0x4d   :  { %604 = vmatpush3.bf16.msra.mxu0 %v603_v5  ;;  %v612_v13 = vpack.c.bf16 %v88_v12, %v87_v11  ;;  %v615_v16 = vpack.c.bf16 %v90_v15, %v89_v14  ;;  %v91_v17 = vld [vmem:[#allocation5 + $0x50] sm:$0xff]  ;;  %v92_v18 = vld [vmem:[#allocation5 + $0x58] sm:$0xff]  ;;  %v93_v20 = vld [vmem:[#allocation5 + $0x60] sm:$0xff] }
  0x4e   :  { %605 = vmatprep.subr.bf16.mxu0 %v814_v0  ;;  %v618_v19 = vpack.c.bf16 %v92_v18, %v91_v17  ;;  %v94_v21 = vld [vmem:[#allocation5 + $0x68] sm:$0xff]  ;;  %v95_v23 = vld [vmem:[#allocation5 + $0x70] sm:$0xff]  ;;  %v96_v24 = vld [vmem:[#allocation5 + $0x78] sm:$0xff] }
  0x4f   :  { %v621_v22 = vpack.c.bf16 %v94_v21, %v93_v20  ;;  %v624_v25 = vpack.c.bf16 %v96_v24, %v95_v23  ;;  %v80_v26 = vld [vmem:[#allocation2] sm:$0xff]  ;;  %v207_v27 = vld [vmem:[#allocation7] sm:$0xff]  ;;  %v208_v28 = vld [vmem:[#allocation7 + $0x8] sm:$0xff] }
  0x50   :  { %v627_v29 = vpack.c.bf16 %v208_v28, %v207_v27  ;;  %v209_v30 = vld [vmem:[#allocation7 + $0x10] sm:$0xff]  ;;  %v210_v31 = vld [vmem:[#allocation7 + $0x18] sm:$0xff]  ;;  %v211_v33 = vld [vmem:[#allocation7 + $0x20] sm:$0xff] }
  0x51   :  { %607 = vmatpush3.bf16.msra.mxu0 %v606_v7  ;;  %v630_v32 = vpack.c.bf16 %v210_v31, %v209_v30  ;;  %v212_v34 = vld [vmem:[#allocation7 + $0x28] sm:$0xff]  ;;  %v213_v36 = vld [vmem:[#allocation7 + $0x30] sm:$0xff]  ;;  %v214_v37 = vld [vmem:[#allocation7 + $0x38] sm:$0xff] }
  0x52   :  { %608 = vmatprep.subr.bf16.mxu0 %v814_v0  ;;  %628 = vmatpush3.bf16.msra.mxu1 %v627_v29  ;;  %v633_v35 = vpack.c.bf16 %v212_v34, %v211_v33  ;;  %v636_v38 = vpack.c.bf16 %v214_v37, %v213_v36  ;;  %v215_v39 = vld [vmem:[#allocation7 + $0x40] sm:$0xff]  ;;  %v216_v40 = vld [vmem:[#allocation7 + $0x48] sm:$0xff]  ;;  %v217_v42 = vld [vmem:[#allocation7 + $0x50] sm:$0xff] }
  0x53   :  { %629 = vmatprep.subr.bf16.mxu1 %v814_v0  ;;  %v639_v41 = vpack.c.bf16 %v216_v40, %v215_v39  ;;  %v218_v43 = vld [vmem:[#allocation7 + $0x58] sm:$0xff]  ;;  %v219_v45 = vld [vmem:[#allocation7 + $0x60] sm:$0xff]  ;;  %v220_v46 = vld [vmem:[#allocation7 + $0x68] sm:$0xff] }
  0x54   :  { %v642_v44 = vpack.c.bf16 %v218_v43, %v217_v42  ;;  %v645_v47 = vpack.c.bf16 %v220_v46, %v219_v45  ;;  %v221_v48 = vld [vmem:[#allocation7 + $0x70] sm:$0xff]  ;;  %v222_v49 = vld [vmem:[#allocation7 + $0x78] sm:$0xff]  ;;  %v337_v31 = vld [vmem:[#allocation8 + $0x20] sm:$0xff] }
  0x55   :  { %610 = vmatpush3.bf16.msra.mxu0 %v609_v10  ;;  %v648_v50 = vpack.c.bf16 %v222_v49, %v221_v48  ;;  %v935_v10 = vshrl.u32 %v194_v9, 7  ;;  %v167_v11 = vld [vmem:[%s977_s2] sm:$0x3]  ;;  %v335_v28 = vld [vmem:[#allocation8 + $0x10] sm:$0xff]  ;;  %v341_v37 = vld [vmem:[#allocation8 + $0x40] sm:$0xff] }
  0x56   :  { %611 = vmatprep.subr.bf16.mxu0 %v814_v0  ;;  %631 = vmatpush3.bf16.msra.mxu1 %v630_v32  ;;  %v336_v29 = vld [vmem:[#allocation8 + $0x18] sm:$0xff]  ;;  %v338_v32 = vld [vmem:[#allocation8 + $0x28] sm:$0xff]  ;;  %v339_v34 = vld [vmem:[#allocation8 + $0x30] sm:$0xff] }
  0x57   :  { %632 = vmatprep.subr.bf16.mxu1 %v814_v0  ;;  %v196_v14 = vsub.s32 0, %v935_v10  ;;  %v201_v18 = vsub.s32 1, %v935_v10  ;;  %v654_v30 = vpack.c.bf16 %v336_v29, %v335_v28  ;;  %v657_v33 = vpack.c.bf16 %v338_v32, %v337_v31  ;;  %v343_v40 = vld [vmem:[#allocation8 + $0x50] sm:$0xff]  ;;  %v345_v43 = vld [vmem:[#allocation8 + $0x60] sm:$0xff] }
  0x58   :  { %v347_v46 = vld [vmem:[#allocation8 + $0x70] sm:$0xff] }
  0x59   :  { %613 = vmatpush3.bf16.msra.mxu0 %v612_v13 }
  0x5a   :  { %614 = vmatprep.subr.bf16.mxu0 %v814_v0  ;;  %634 = vmatpush3.bf16.msra.mxu1 %v633_v35  ;;  %v340_v35 = vld [vmem:[#allocation8 + $0x38] sm:$0xff] }
  0x5b   :  { %635 = vmatprep.subr.bf16.mxu1 %v814_v0  ;;  %v660_v36 = vpack.c.bf16 %v340_v35, %v339_v34 }
  0x5d   :  { %616 = vmatpush3.bf16.msra.mxu0 %v615_v16 }
  0x5e   :  { %617 = vmatprep.subr.bf16.mxu0 %v814_v0  ;;  %637 = vmatpush3.bf16.msra.mxu1 %v636_v38  ;;  %v342_v38 = vld [vmem:[#allocation8 + $0x48] sm:$0xff] }
  0x5f   :  { %638 = vmatprep.subr.bf16.mxu1 %v814_v0  ;;  %v663_v39 = vpack.c.bf16 %v342_v38, %v341_v37 }
  0x61   :  { %619 = vmatpush3.bf16.msra.mxu0 %v618_v19 }
  0x62   :  { %620 = vmatprep.subr.bf16.mxu0 %v814_v0  ;;  %640 = vmatpush3.bf16.msra.mxu1 %v639_v41  ;;  %v344_v41 = vld [vmem:[#allocation8 + $0x58] sm:$0xff] }
  0x63   :  { %641 = vmatprep.subr.bf16.mxu1 %v814_v0  ;;  %v666_v42 = vpack.c.bf16 %v344_v41, %v343_v40 }
  0x65   :  { %622 = vmatpush3.bf16.msra.mxu0 %v621_v22 }
  0x66   :  { %623 = vmatprep.subr.bf16.mxu0 %v814_v0  ;;  %643 = vmatpush3.bf16.msra.mxu1 %v642_v44  ;;  %v346_v44 = vld [vmem:[#allocation8 + $0x68] sm:$0xff] }
  0x67   :  { %644 = vmatprep.subr.bf16.mxu1 %v814_v0  ;;  %v669_v45 = vpack.c.bf16 %v346_v44, %v345_v43 }
  0x69   :  { %625 = vmatpush3.bf16.msra.mxu0 %v624_v25  ;;  %v333_v25 = vld [vmem:[#allocation8] sm:$0xff] }
  0x6a   :  { %650 = vmatprep.subr.bf16.mxu0 %v814_v0  ;;  %646 = vmatpush3.bf16.msra.mxu1 %v645_v47  ;;  %v348_v47 = vld [vmem:[#allocation8 + $0x78] sm:$0xff] }
  0x6b   :  { %647 = vmatprep.subr.bf16.mxu1 %v814_v0  ;;  %v672_v48 = vpack.c.bf16 %v348_v47, %v347_v46 }
  0x6c   :  { %530 = vmatmul.mubr.f32.vlgmr.msra.gmra.mrb[0].mxu0 %v80_v26  ;;  %v334_v26 = vld [vmem:[#allocation8 + $0x8] sm:$0xff] }
  0x6d   :  { %599 = vmatprep.mubr.msk.f32.mxu0 %vm815_vm0, %v816_v1  ;;  %v651_v27 = vpack.c.bf16 %v334_v26, %v333_v25 }
  0x6e   :  { %649 = vmatpush3.bf16.msra.mxu1 %v648_v50 }
  0x6f   :  { %652 = vmatpush3.bf16.msra.mxu0 %v651_v27 }
  0x70   :  { %653 = vmatprep.subr.bf16.mxu0 %v814_v0 }
  0x73   :  { %655 = vmatpush3.bf16.msra.mxu0 %v654_v30 }
  0x74   :  { %656 = vmatprep.subr.bf16.mxu0 %v814_v0 }
  0x77   :  { %658 = vmatpush3.bf16.msra.mxu0 %v657_v33 }
  0x78   :  { %659 = vmatprep.subr.bf16.mxu0 %v814_v0 }
  0x7b   :  { %661 = vmatpush3.bf16.msra.mxu0 %v660_v36 }
  0x7c   :  { %662 = vmatprep.subr.bf16.mxu0 %v814_v0 }
  0x7f   :  { %664 = vmatpush3.bf16.msra.mxu0 %v663_v39 }
  0x80   :  { %665 = vmatprep.subr.bf16.mxu0 %v814_v0 }
  0x83   :  { %667 = vmatpush3.bf16.msra.mxu0 %v666_v42 }
  0x84   :  { %668 = vmatprep.subr.bf16.mxu0 %v814_v0 }
  0x87   :  { %670 = vmatpush3.bf16.msra.mxu0 %v669_v45 }
  0x88   :  { %671 = vmatprep.subr.bf16.mxu0 %v814_v0 }
  0x8b   :  { %673 = vmatpush3.bf16.msra.mxu0 %v672_v48 }
 0x13f   :  { %v163_v51 = vpop.f32.mrb[0].mxu0 }
 0x140   :  { %v168_v52 = vrot.slane %v163_v51, 4  ;;  %v174_v53 = vmul.f32 %v163_v51, %v163_v51  ;;  %v531_v54 = vpop.f32.mrb[1].mxu0 }
 0x142   :  { %v169_v55 = vadd.f32 %v168_v52, %v163_v51  ;;  %v175_v56 = vrot.slane %v174_v53, 4 }
 0x144   :  { %v170_v57 = vrot.slane %v169_v55, 2  ;;  %v176_v58 = vadd.f32 %v175_v56, %v174_v53 }
 0x146   :  { %v171_v59 = vadd.f32 %v170_v57, %v169_v55  ;;  %v177_v60 = vrot.slane %v176_v58, 2 }
 0x148   :  { %v172_v61 = vrot.slane %v171_v59, 1  ;;  %v178_v62 = vadd.f32 %v177_v60, %v176_v58 }
 0x14a   :  { %v173_v63 = vadd.f32 %v172_v61, %v171_v59  ;;  %v179_v1 = vrot.slane %v178_v62, 1 }
 0x14c   :  { %v180_v2 = vadd.f32 %v179_v1, %v178_v62  ;;  %v181_v3 = vmul.f32 0.125, %v173_v63 }
 0x14e   :  { %v182_v4 = vmul.f32 0.125, %v180_v2  ;;  %v183_v5 = vmul.f32 %v181_v3, %v181_v3 }
 0x150   :  { %v184_v6 = vsub.f32 %v182_v4, %v183_v5 }
 0x152   :  { %v185_v7 = vmax.f32 %v184_v6, 0.0  ;;  %v293_v6 = vld [vmem:[%s979_s4] sm:$0x3]  ;;  %s817_s4 = smov [#allocation10]  }
 0x153   :  { %s434_s28 = sshll.u32 %s817_s4, 4  ;;  %s435_s28 = int_to_ptr.vmem [resolvable:$true] %s434_s28 }
 0x154   :  { %v186_v8 = vadd.f32 1e-05, %v185_v7  ;;  %s778_s29 = scalar_lea.vmem %s435_s28, 128  ;;  %p783_p5 = scmp.lt.s32.totalorder %s435_s28, %s435_s28 }
 0x155   :  { %p779_p4 = scmp.ne.s32.totalorder %s435_s28, %s778_s29  ;;  %p784_p6 = scmp.lt.s32.totalorder %s778_s29, %s778_s29 }
 0x156   :  { %684 = vrsqrt.f32 %v186_v8 }
 0x157   :  { %p785_p7 = por %p784_p6, %p783_p5 }
 0x159   :  { %p786_p8 = pnand %p785_p7, %p779_p4 }
 0x160   :  { %v685_v12 = vpop.eup %684 }
 0x161   :  { %v188_v13 = vmul.f32 %v685_v12, %v167_v11 }
 0x163   :  { %v189_v15 = vmul.f32 %v188_v13, %v181_v3  ;;  %v197_v16 = vrot.slane %v188_v13, %v196_v14 }
 0x165   :  { %v191_v17 = vrot.slane %v189_v15, 7  ;;  %v198_v20 = vmul.f32 %v197_v16, %v163_v51 }
 0x167   :  { %v193_v19 = vsub.f32 %v167_v11, %v191_v17 }
 0x169   :  { %v202_v21 = vrot.slane %v193_v19, %v201_v18 }
 0x16b   :  { %v203_v22 = vadd.f32 %v202_v21, %v198_v20  ;;  %v445_v21 = vld [vmem:[%s981_s6] ss:$0 sm:$0xff] }
 0x16d   :  { %vm204_vm1 = vcmp.ge.f32.partialorder %v203_v22, 0.0  ;;  %v205_v23 = vmul.f32 0.01, %v203_v22 }
 0x16f   :  { %v206_v24 = vsel %vm204_vm1, %v203_v22, %v205_v23 }
 0x170   :  { %565 = vmatmul.mubr.f32.vlgmr.msra.gmra.mrb[0].mxu1 %v206_v24 }
 0x243   :  { %v289_v49 = vpop.f32.mrb[0].mxu1 }
 0x244   :  { %v294_v50 = vrot.slane %v289_v49, 4  ;;  %v300_v51 = vmul.f32 %v289_v49, %v289_v49  ;;  %v566_v52 = vpop.f32.mrb[1].mxu1 }
 0x246   :  { %v295_v53 = vadd.f32 %v294_v50, %v289_v49  ;;  %v301_v54 = vrot.slane %v300_v51, 4 }
 0x248   :  { %v296_v55 = vrot.slane %v295_v53, 2  ;;  %v302_v56 = vadd.f32 %v301_v54, %v300_v51 }
 0x24a   :  { %v297_v57 = vadd.f32 %v296_v55, %v295_v53  ;;  %v303_v58 = vrot.slane %v302_v56, 2 }
 0x24c   :  { %v298_v59 = vrot.slane %v297_v57, 1  ;;  %v304_v60 = vadd.f32 %v303_v58, %v302_v56 }
 0x24e   :  { %v299_v61 = vadd.f32 %v298_v59, %v297_v57  ;;  %v305_v62 = vrot.slane %v304_v60, 1 }
 0x250   :  { %v306_v63 = vadd.f32 %v305_v62, %v304_v60  ;;  %v307_v0 = vmul.f32 0.125, %v299_v61 }
 0x252   :  { %v308_v1 = vmul.f32 0.125, %v306_v63  ;;  %v309_v2 = vmul.f32 %v307_v0, %v307_v0 }
 0x254   :  { %v310_v3 = vsub.f32 %v308_v1, %v309_v2 }
 0x256   :  { %v311_v4 = vmax.f32 %v310_v3, 0.0 }
 0x258   :  { %v312_v5 = vadd.f32 1e-05, %v311_v4 }
 0x25a   :  { %686 = vrsqrt.f32 %v312_v5 }
 0x264   :  { %v687_v7 = vpop.eup %686 }
 0x265   :  { %v314_v8 = vmul.f32 %v687_v7, %v293_v6 }
 0x267   :  { %v315_v9 = vmul.f32 %v314_v8, %v307_v0  ;;  %v323_v12 = vrot.slane %v314_v8, %v196_v14 }
 0x269   :  { %v317_v11 = vrot.slane %v315_v9, 7  ;;  %v324_v15 = vmul.f32 %v323_v12, %v289_v49 }
 0x26b   :  { %v319_v13 = vsub.f32 %v293_v6, %v317_v11 }
 0x26d   :  { %v328_v16 = vrot.slane %v319_v13, %v201_v18 }
 0x26f   :  { %v329_v17 = vadd.f32 %v328_v16, %v324_v15 }
 0x271   :  { %vm330_vm2 = vcmp.ge.f32.partialorder %v329_v17, 0.0  ;;  %v331_v19 = vmul.f32 0.01, %v329_v17 }
 0x273   :  { %v332_v20 = vsel %vm330_vm2, %v329_v17, %v331_v19 }
 0x274   :  { %600 = vmatmul.mubr.f32.vlgmr.msra.gmra.mrb[2].mxu0 %v332_v20 }
 0x347   :  { %v422_v22 = vpop.f32.mrb[2].mxu0 }
 0x348   :  { %v423_v23 = vadd.f32 %v445_v21, %v422_v22  ;;  %v601_v24 = vpop.f32.mrb[3].mxu0 }
 0x34a   :  { %688 = vtanh.f32 %v423_v23 }
 0x354   :  { %v689_v14 = vpop.eup %688 }
 0x355   :  { %427 = vst [vmem:[#allocation10] sm:$0xff] %v689_v14 }
 0x356   :  { %789 = shalt.err (!%p786_p8)
}
 0x357   :  { %s790_s6 = scalar_lea.hbm %s982_s7, 128 }
 0x358   :  { %p791_p9 = scmp.ne.s32.totalorder %s982_s7, %s790_s6  ;;  %p794_p10 = scmp.lt.u32.totalorder %s790_s6, %s982_s7 }
 0x35a   :  { %p796_p11 = pnand %p794_p10, %p791_p9 }
 0x35c   :  { %799 = shalt.err (!%p796_p11)
}
 0x35d   :  { %437 = dma.vmem_to_hbm [thread:$0]  %s435_s28, 128, %s982_s7, [#allocation4]  }
 0x35e   :  { %806 = dma.done.wait [#allocation4], 128  }
 0x35f   :  { %807 = vsyncadd [#allocation4], 4294967168 }
 0x360   :  { %441 = vsyncpa [#allocation3], 1 }
 0x361   :  { %442 = vsyncpa [#allocation6], 1 }
 0x362   :  { %443 = vsyncpa [#allocation9], 1 }
 0x363   :  { %444 = vsyncpa [#allocation4], 1 }

</bundles_post_ra>
